<compile_context>
chip_gen: v6e
topology: v6e:2x2x1
jax: 0.10.0
libtpu: 0.0.40
codegen_flags: <defaults>
</compile_context>

<pallas_src>
import numpy as np
import jax
import jax.numpy as jnp
from jax.experimental import pallas as pl
from jax.experimental.pallas import tpu as pltpu

RESNET_FEAT = 512
CNN_EMBED_DIM = 256


def _round_up(x, m):
    return ((x + m - 1) // m) * m


def _cdiv(a, b):
    return (a + b - 1) // b


def _vmem_limit_bytes():
    """Per-generation scoped-VMEM budget (v5e/v6e: 128 MiB phys, v7x: 64 MiB)."""
    cap = 64 * 1024 * 1024
    try:
        info = pltpu.get_tpu_info()
        cap = int(getattr(info, "vmem_capacity_bytes", cap))
    except Exception:
        pass
    return int(max(32 * 1024 * 1024, min(cap * 0.8, 100 * 1024 * 1024)))


def _plan_tiles(R, K, vmem_limit, out_itemsize):
    """Pick (tm, tk, nk) so double-buffered tiles fit the VMEM budget."""
    K128 = _round_up(K, 128)
    tk_target = 2048
    nk = max(1, _cdiv(K128, tk_target))
    tk = _round_up(_cdiv(K, nk), 128)          # K zero-padding <= 127 per tile
    K_pad = nk * tk

    # VMEM accounting (bytes): weight dbl-buf + per-tm-row streams.
    w_bytes = 2 * tk * CNN_EMBED_DIM * 2                      # bf16, dbl-buf
    budget = int(vmem_limit * 0.85) - w_bytes
    per_row = (2 * tk * 2                                      # x dbl-buf bf16
               + CNN_EMBED_DIM * 4                             # f32 accumulator
               + 2 * CNN_EMBED_DIM * out_itemsize              # out dbl-buf
               + 2 * 4)                                        # mask dbl-buf
    tm_cap = max(8, (budget // per_row) // 8 * 8)
    tm = min(1024, tm_cap, _round_up(R, 8))
    # Keep >= 2 row tiles when R allows, so the "parallel" axis can shard
    # across the two TensorCores of a v7x chip.
    if _round_up(R, 8) > 8 and tm >= _round_up(R, 8):
        tm = _round_up(_cdiv(R, 2), 8)
    num_row_tiles = _cdiv(R, tm)
    R_pad = num_row_tiles * tm
    return tm, tk, nk, num_row_tiles, R_pad, K_pad


def fold_params(w_bk, b_bk, w_fc, b_fc, H, W, K_pad):
    """Fold GAP + backbone-Linear(512) + fc(256) into one (K_pad, 256) projection.

    Exact in f32: relu comes only after fc, so the two linear maps compose.
    Static w.r.t. activations — hoist/cache this in a real pipeline.
    """
    C = w_bk.shape[0]
    K = C * H * W
    w_bk32 = jnp.asarray(w_bk, jnp.float32)
    w_fc32 = jnp.asarray(w_fc, jnp.float32)
    w_comb = (w_bk32 / float(H * W)) @ w_fc32                              # (C, 256)
    b_comb = (jnp.asarray(b_bk, jnp.float32).reshape(1, RESNET_FEAT) @ w_fc32
              + jnp.asarray(b_fc, jnp.float32).reshape(1, CNN_EMBED_DIM))  # (1, 256)
    # GAP fused as repeated rows: row c*H*W + hw = w_comb[c].
    w_big = jnp.repeat(w_comb, H * W, axis=0)                              # (K, 256)
    if K_pad > K:
        w_big = jnp.pad(w_big, ((0, K_pad - K), (0, 0)))
    return w_big.astype(jnp.bfloat16), b_comb


def _crop_encoder_kernel(tile_fetch_ref,   # SMEM (num_row_tiles,) int32 (index_map only)
                         tile_valid_ref,   # SMEM (num_row_tiles,) int32
                         x_ref,            # (TM, TK)   bf16
                         w_ref,            # (TK, 256)  bf16  (folded projection)
                         b_ref,            # (1, 256)   f32   (folded bias)
                         mask_ref,         # (TM, 1)    f32   (pad_sequence mask)
                         o_ref,            # (TM, 256)  out dtype
                         acc_ref):         # (TM, 256)  f32 scratch
    i = pl.program_id(0)
    k = pl.program_id(1)
    nk = pl.num_programs(1)
    tile_has_work = tile_valid_ref[i] > 0

    @pl.when(k == 0)
    def _():
        acc_ref[...] = jnp.zeros_like(acc_ref)

    # Single folded projection: x (rows of C*H*W) @ w_comb -> 256, K-tiled.
    @pl.when(tile_has_work)
    def _():
        acc_ref[...] += jnp.dot(x_ref[...], w_ref[...],
                                preferred_element_type=jnp.float32)

    @pl.when(k == nk - 1)
    def _():
        @pl.when(tile_has_work)
        def _():
            y = jnp.maximum(acc_ref[...] + b_ref[...], 0.0)
            # pad_sequence(padding_value=0): zero rows past each seq length.
            o_ref[...] = (y * mask_ref[...]).astype(o_ref.dtype)

        @pl.when(jnp.logical_not(tile_has_work))
        def _():
            o_ref[...] = jnp.zeros_like(o_ref)


def res18_crop_encoder(x_5d, x_lengths, w_bk, b_bk, w_fc, b_fc,
                       *, out_dtype=jnp.bfloat16):
    """x_5d: (B, T, C, H, W); x_lengths: python list of ints per batch item."""
    B, T_full, C, H, W = x_5d.shape
    lengths = [int(l) for l in x_lengths]
    max_t = max(lengths)
    assert 1 <= max_t <= T_full

    K = C * H * W
    R = B * max_t

    vmem_limit = _vmem_limit_bytes()
    out_itemsize = int(np.dtype(out_dtype).itemsize)
    tm, tk, nk, num_row_tiles, R_pad, K_pad = _plan_tiles(
        R, K, vmem_limit, out_itemsize)

    # Folded projection (static w.r.t. activations; cache in real pipelines).
    w_big, b_comb = fold_params(w_bk, b_bk, w_fc, b_fc, H, W, K_pad)

    # Lane-dense activation rows: (B*max_t, C*H*W).  Feed x in bf16 upstream
    # so the cast is a no-op; pad only when shapes are not tile-aligned.
    x = x_5d[:, :max_t].reshape(R, K)
    if x.dtype != jnp.bfloat16:
        x = x.astype(jnp.bfloat16)
    if R_pad > R or K_pad > K:
        x = jnp.pad(x, ((0, R_pad - R), (0, K_pad - K)))

    # pad_sequence mask + per-row-tile schedule (host-side / static).
    rows = np.arange(R_pad, dtype=np.int64)
    t_ids = rows % max_t
    b_ids = np.minimum(rows // max_t, B - 1)
    lens = np.asarray(lengths, dtype=np.int64)
    valid = (rows < R) & (t_ids < lens[b_ids])
    mask = jnp.asarray(valid.astype(np.float32).reshape(R_pad, 1))
    tiles_valid = valid.reshape(num_row_tiles, tm).any(axis=1)
    tile_valid = jnp.asarray(tiles_valid.astype(np.int32))
    # Fetch index: valid tile -> itself; fully-padded tile -> last valid tile,
    # so the unchanged block index lets Pallas elide the x DMA (nk == 1 runs).
    idx = np.arange(num_row_tiles, dtype=np.int64)
    tile_fetch = np.maximum(
        np.maximum.accumulate(np.where(tiles_valid, idx, -1)), 0)
    tile_fetch = jnp.asarray(tile_fetch.astype(np.int32))

    out_flat = pl.pallas_call(
        _crop_encoder_kernel,
        out_shape=jax.ShapeDtypeStruct((R_pad, CNN_EMBED_DIM), out_dtype),
        grid_spec=pltpu.PrefetchScalarGridSpec(
            num_scalar_prefetch=2,
            grid=(num_row_tiles, nk),
            in_specs=[
                pl.BlockSpec((tm, tk), lambda i, k, tf, tv: (tf[i], k)),
                pl.BlockSpec((tk, CNN_EMBED_DIM), lambda i, k, tf, tv: (k, 0)),
                pl.BlockSpec((1, CNN_EMBED_DIM), lambda i, k, tf, tv: (0, 0)),
                pl.BlockSpec((tm, 1), lambda i, k, tf, tv: (tf[i], 0)),
            ],
            out_specs=pl.BlockSpec((tm, CNN_EMBED_DIM),
                                   lambda i, k, tf, tv: (i, 0)),
            scratch_shapes=[pltpu.VMEM((tm, CNN_EMBED_DIM), jnp.float32)],
        ),
        compiler_params=pltpu.CompilerParams(
            dimension_semantics=("parallel", "arbitrary"),
            vmem_limit_bytes=vmem_limit),
    )(tile_fetch, tile_valid, x, w_big, b_comb, mask)

    return out_flat[:R].reshape(B, max_t, CNN_EMBED_DIM)


def _reference(x_5d, x_lengths, w_bk, b_bk, w_fc, b_fc):
    """Pure-JAX f32 reference mirroring the PyTorch forward (unfused)."""
    lengths = [int(l) for l in x_lengths]
    max_t = max(lengths)
    x = x_5d[:, :max_t].astype(jnp.float32)
    pooled = jnp.mean(x, axis=(-1, -2))                                  # (B, T, C)
    feat = pooled @ w_bk.astype(jnp.float32) + b_bk.astype(jnp.float32)  # (B, T, 512)
    y = jnp.maximum(
        feat @ w_fc.astype(jnp.float32) + b_fc.astype(jnp.float32), 0.0)  # (B, T, 256)
    t_idx = jnp.arange(max_t)[None, :, None]
    lens = jnp.asarray(lengths, jnp.int32)[:, None, None]
    return jnp.where(t_idx < lens, y, 0.0)


if __name__ == "__main__":
    key = jax.random.PRNGKey(0)
    B, T, C, H, W = 2, 8, 4, 16, 16
    x_lengths = [8, 5]

    k_x, k_wbk, k_bbk, k_wfc, k_bfc = jax.random.split(key, 5)
    # Keep the activation stream in bf16 upstream (lane-dense C*H*W last dim)
    # so the kernel wrapper does not spend an extra HBM cast/pad pass.
    x_5d = jax.random.normal(k_x, (B, T, C, H, W), dtype=jnp.float32).astype(
        jnp.bfloat16)

    # Deterministic synthetic parameters (structural stand-in for the ResNet tail).
    w_bk = jax.random.normal(k_wbk, (C, RESNET_FEAT), jnp.float32) * (1.0 / C ** 0.5)
    b_bk = jax.random.normal(k_bbk, (1, RESNET_FEAT), jnp.float32) * 0.01
    w_fc = jax.random.normal(k_wfc, (RESNET_FEAT, CNN_EMBED_DIM), jnp.float32) * (
        1.0 / RESNET_FEAT ** 0.5)
    b_fc = jax.random.normal(k_bfc, (1, CNN_EMBED_DIM), jnp.float32) * 0.01

    out = res18_crop_encoder(x_5d, x_lengths, w_bk, b_bk, w_fc, b_fc)
    out = jax.block_until_ready(out)

    ref = _reference(x_5d, x_lengths, w_bk, b_bk, w_fc, b_fc)
    assert out.shape == (B, max(x_lengths), CNN_EMBED_DIM), out.shape
    # bf16 MXU feeds, f32 accumulation, bf16 output -> loosened tolerance.
    assert jnp.allclose(out.astype(jnp.float32), ref, atol=2e-2, rtol=2e-2), \
        "mismatch vs reference"

    print("KERNEL_OK")
</pallas_src>

<mosaic_0001>
module attributes {stable_mosaic.version = 11 : i64} {
  func.func @_crop_encoder_kernel(%arg0: i32, %arg1: i32, %arg2: memref<2xi32, #tpu.memory_space<smem>>, %arg3: memref<2xi32, #tpu.memory_space<smem>>, %arg4: memref<8x1024xbf16, #tpu.memory_space<vmem>>, %arg5: memref<1024x256xbf16, #tpu.memory_space<vmem>>, %arg6: memref<1x256xf32, #tpu.memory_space<vmem>>, %arg7: memref<8x1xf32, #tpu.memory_space<vmem>>, %arg8: memref<8x256xbf16, #tpu.memory_space<vmem>>, %arg9: memref<8x256xf32, #tpu.memory_space<vmem>>) attributes {dimension_semantics = [#tpu.dimension_semantics<parallel>, #tpu.dimension_semantics<arbitrary>], iteration_bounds = array<i64: 2, 1>, scalar_prefetch = 2 : i64, scratch_operands = 1 : i64, tpu.core_type = #tpu.core_type<tc>, window_params = [{transform_indices = @transform_0, window_bounds = array<i64: 8, 1024>}, {transform_indices = @transform_1, window_bounds = array<i64: 1024, 256>}, {pipeline_mode = #tpu.pipeline_mode<synchronous>, transform_indices = @transform_2, window_bounds = array<i64: 1, 256>}, {transform_indices = @transform_3, window_bounds = array<i64: 8, 1>}, {transform_indices = @transform_4, window_bounds = array<i64: 8, 256>}]} {
    %0 = arith.index_cast %arg0 : i32 to index
    %1 = memref.load %arg3[%0] : memref<2xi32, #tpu.memory_space<smem>>
    %c0_i32 = arith.constant 0 : i32
    %2 = arith.cmpi sgt, %1, %c0_i32 : i32
    %c0_i32_0 = arith.constant 0 : i32
    %3 = arith.cmpi eq, %arg1, %c0_i32_0 : i32
    %4 = arith.extui %3 : i1 to i32
    %c0_i32_1 = arith.constant 0 : i32
    %5 = arith.cmpi ne, %4, %c0_i32_1 : i32
    scf.if %5 {
      %cst = arith.constant 0.000000e+00 : f32
      %11 = vector.broadcast %cst : f32 to vector<8x256xf32>
      %c0 = arith.constant 0 : index
      %c0_5 = arith.constant 0 : index
      %12 = vector.load %arg9[%c0, %c0_5] : memref<8x256xf32, #tpu.memory_space<vmem>>, vector<8x256xf32>
      tpu.vector_store %arg9[%c0, %c0_5], %11 {strides = array<i32>} : memref<8x256xf32, #tpu.memory_space<vmem>>, vector<8x256xf32>,
    } else {
    }
    %6 = arith.extui %2 : i1 to i32
    %c0_i32_2 = arith.constant 0 : i32
    %7 = arith.cmpi ne, %6, %c0_i32_2 : i32
    scf.if %7 {
      %c0 = arith.constant 0 : index
      %c0_5 = arith.constant 0 : index
      %11 = vector.load %arg9[%c0, %c0_5] : memref<8x256xf32, #tpu.memory_space<vmem>>, vector<8x256xf32>
      %c0_6 = arith.constant 0 : index
      %c0_7 = arith.constant 0 : index
      %12 = vector.load %arg4[%c0_6, %c0_7] : memref<8x1024xbf16, #tpu.memory_space<vmem>>, vector<8x1024xbf16>
      %c0_8 = arith.constant 0 : index
      %c0_9 = arith.constant 0 : index
      %13 = vector.load %arg5[%c0_8, %c0_9] : memref<1024x256xbf16, #tpu.memory_space<vmem>>, vector<1024x256xbf16>
      %cst = arith.constant dense<0.000000e+00> : vector<8x256xf32>
      %14 = tpu.matmul %12, %13, %cst {dimension_numbers = #tpu.dot_dimension_numbers<[1], [0], [0], [1], [0, 0, 1, 1], [], []>} : vector<8x1024xbf16>, vector<1024x256xbf16>, vector<8x256xf32> -> vector<8x256xf32>
      %15 = arith.addf %11, %14 : vector<8x256xf32>
      %c0_10 = arith.constant 0 : index
      %c0_11 = arith.constant 0 : index
      %16 = vector.load %arg9[%c0_10, %c0_11] : memref<8x256xf32, #tpu.memory_space<vmem>>, vector<8x256xf32>
      tpu.vector_store %arg9[%c0_10, %c0_11], %15 {strides = array<i32>} : memref<8x256xf32, #tpu.memory_space<vmem>>, vector<8x256xf32>,
    } else {
    }
    %c0_i32_3 = arith.constant 0 : i32
    %8 = arith.cmpi eq, %arg1, %c0_i32_3 : i32
    %9 = arith.extui %8 : i1 to i32
    %c0_i32_4 = arith.constant 0 : i32
    %10 = arith.cmpi ne, %9, %c0_i32_4 : i32
    scf.if %10 {
      %11 = arith.extui %2 : i1 to i32
      %c0_i32_5 = arith.constant 0 : i32
      %12 = arith.cmpi ne, %11, %c0_i32_5 : i32
      scf.if %12 {
        %c0 = arith.constant 0 : index
        %c0_7 = arith.constant 0 : index
        %16 = vector.load %arg9[%c0, %c0_7] : memref<8x256xf32, #tpu.memory_space<vmem>>, vector<8x256xf32>
        %c0_8 = arith.constant 0 : index
        %c0_9 = arith.constant 0 : index
        %17 = vector.load %arg6[%c0_8, %c0_9] : memref<1x256xf32, #tpu.memory_space<vmem>>, vector<1x256xf32>
        %18 = vector.broadcast %17 : vector<1x256xf32> to vector<8x256xf32>
        %19 = arith.addf %16, %18 : vector<8x256xf32>
        %cst = arith.constant 0.000000e+00 : f32
        %20 = vector.broadcast %cst : f32 to vector<8x256xf32>
        %21 = arith.maximumf %19, %20 : vector<8x256xf32>
        %c0_10 = arith.constant 0 : index
        %c0_11 = arith.constant 0 : index
        %22 = vector.load %arg7[%c0_10, %c0_11] : memref<8x1xf32, #tpu.memory_space<vmem>>, vector<8x1xf32>
        %23 = vector.broadcast %22 : vector<8x1xf32> to vector<8x256xf32>
        %24 = arith.mulf %21, %23 : vector<8x256xf32>
        %25 = arith.truncf %24 : vector<8x256xf32> to vector<8x256xbf16>
        %c0_12 = arith.constant 0 : index
        %c0_13 = arith.constant 0 : index
        %26 = vector.load %arg8[%c0_12, %c0_13] : memref<8x256xbf16, #tpu.memory_space<vmem>>, vector<8x256xbf16>
        tpu.vector_store %arg8[%c0_12, %c0_13], %25 {strides = array<i32>} : memref<8x256xbf16, #tpu.memory_space<vmem>>, vector<8x256xbf16>,
      } else {
      }
      %true = arith.constant true
      %13 = arith.xori %2, %true : i1
      %14 = arith.extui %13 : i1 to i32
      %c0_i32_6 = arith.constant 0 : i32
      %15 = arith.cmpi ne, %14, %c0_i32_6 : i32
      scf.if %15 {
        %cst = arith.constant 0.000000e+00 : bf16
        %16 = vector.broadcast %cst : bf16 to vector<8x256xbf16>
        %c0 = arith.constant 0 : index
        %c0_7 = arith.constant 0 : index
        %17 = vector.load %arg8[%c0, %c0_7] : memref<8x256xbf16, #tpu.memory_space<vmem>>, vector<8x256xbf16>
        tpu.vector_store %arg8[%c0, %c0_7], %16 {strides = array<i32>} : memref<8x256xbf16, #tpu.memory_space<vmem>>, vector<8x256xbf16>,
      } else {
      }
    } else {
    }
    return
  }
  func.func @transform_0(%arg0: i32, %arg1: i32, %arg2: memref<2xi32, #tpu.memory_space<smem>>, %arg3: memref<2xi32, #tpu.memory_space<smem>>) -> (i32, i32) {
    %0 = arith.index_cast %arg0 : i32 to index
    %1 = memref.load %arg2[%0] : memref<2xi32, #tpu.memory_space<smem>>
    %c0_i32 = arith.constant 0 : i32
    return %1, %arg1 : i32, i32
  }
  func.func @transform_1(%arg0: i32, %arg1: i32, %arg2: memref<2xi32, #tpu.memory_space<smem>>, %arg3: memref<2xi32, #tpu.memory_space<smem>>) -> (i32, i32) {
    %c0_i32 = arith.constant 0 : i32
    %c0_i32_0 = arith.constant 0 : i32
    return %arg1, %c0_i32 : i32, i32
  }
  func.func @transform_2(%arg0: i32, %arg1: i32, %arg2: memref<2xi32, #tpu.memory_space<smem>>, %arg3: memref<2xi32, #tpu.memory_space<smem>>) -> (i32, i32) {
    %c0_i32 = arith.constant 0 : i32
    %c0_i32_0 = arith.constant 0 : i32
    %c0_i32_1 = arith.constant 0 : i32
    return %c0_i32, %c0_i32_0 : i32, i32
  }
  func.func @transform_3(%arg0: i32, %arg1: i32, %arg2: memref<2xi32, #tpu.memory_space<smem>>, %arg3: memref<2xi32, #tpu.memory_space<smem>>) -> (i32, i32) {
    %0 = arith.index_cast %arg0 : i32 to index
    %1 = memref.load %arg2[%0] : memref<2xi32, #tpu.memory_space<smem>>
    %c0_i32 = arith.constant 0 : i32
    %c0_i32_0 = arith.constant 0 : i32
    return %1, %c0_i32 : i32, i32
  }
  func.func @transform_4(%arg0: i32, %arg1: i32, %arg2: memref<2xi32, #tpu.memory_space<smem>>, %arg3: memref<2xi32, #tpu.memory_space<smem>>) -> (i32, i32) {
    %c0_i32 = arith.constant 0 : i32
    %c0_i32_0 = arith.constant 0 : i32
    return %arg0, %c0_i32 : i32, i32
  }
}

</mosaic_0001>

<bundles_post_ra>
// kernel: tpu_custom_call.1
= control target key start
LH: loop header
LB: loop body
LE: loop exit
PB: predicated region body
PF: predicated region fallthrough
CT: control target
= control target key end

     0   :  { %s2395_s0 = inlined_call_operand.vmem [shape: s32[2], index: 0, kind: input, shape index: {}]   ;;  %s2396_s2 = inlined_call_operand.hbm [shape: bf16[16,1024], index: 2, kind: input, shape index: {}]   ;;  %s2397_s3 = inlined_call_operand.hbm [shape: bf16[1024,256], index: 3, kind: input, shape index: {}]   ;;  %s2398_s4 = inlined_call_operand.vmem [shape: f32[1,256], index: 4, kind: input, shape index: {}]   ;;  %s2399_s5 = inlined_call_operand.vmem [shape: f32[16,1], index: 5, kind: input, shape index: {}]   ;;  %s2400_s6 = inlined_call_operand.hbm [shape: bf16[16,256], index: 6, kind: output, shape index: {}]   ;;  %s2401_s1 = inlined_call_operand.vmem [shape: s32[2], index: 1, kind: input, shape index: {}]  }
   0x1   :  { %2412 = sst [smem:[#allocation23_spill]] %s2397_s3  ;;  %s11_s23 = sshll.u32 %s2395_s0, 4  ;;  %s12_s23 = int_to_ptr.vmem [resolvable:$true] %s11_s23 }
   0x2   :  { %s15_s26 = sshll.u32 %s2401_s1, 4  ;;  %s1914_s27 = scalar_lea.vmem %s12_s23, 16  ;;  %s16_s26 = int_to_ptr.vmem [resolvable:$true] %s15_s26 }
   0x3   :  { %p1915_p0 = scmp.ne.s32.totalorder %s12_s23, %s1914_s27  ;;  %p1919_p1 = scmp.lt.s32.totalorder %s12_s23, %s12_s23 }
   0x4   :  { %p1920_p2 = scmp.lt.s32.totalorder %s1914_s27, %s1914_s27 }
   0x6   :  { %p1921_p3 = por %p1920_p2, %p1919_p1 }
   0x8   :  { %p1922_p4 = pnand %p1921_p3, %p1915_p0 }
   0xa   :  { %1925 = shalt.err (!%p1922_p4)  }
   0xb   :  { %s2104_s28 = smov [#allocation4]   ;;  %s1926_s29 = scalar_lea.vmem %s16_s26, 16 }
   0xc   :  { %14 = dma.vmem_to_smem %s12_s23, 16, %s2104_s28, [#allocation3] }
   0xd   :  { %p1927_p5 = scmp.ne.s32.totalorder %s16_s26, %s1926_s29  ;;  %p1931_p6 = scmp.lt.s32.totalorder %s16_s26, %s16_s26 }
   0xe   :  { %p1932_p7 = scmp.lt.s32.totalorder %s1926_s29, %s1926_s29 }
  0x10   :  { %p1933_p8 = por %p1932_p7, %p1931_p6 }
  0x12   :  { %p1934_p9 = pnand %p1933_p8, %p1927_p5 }
  0x14   :  { %1937 = shalt.err (!%p1934_p9)  }
  0x15   :  { %s2105_s0 = smov [#allocation5]  }
  0x16   :  { %18 = dma.vmem_to_smem %s16_s26, 16, %s2105_s0, [#allocation3] }
  0x17   :  { %2054 = dma.done.wait [#allocation3], 32 }
  0x18   :  { %2055 = vsyncadd [#allocation3], 4294967264 }
  0x19   :  { %20 = sfence }
  0x1a   :  { %21 = vsyncpa [#allocation7], 0 }
  0x1b   :  { %23 = vsyncpa [#allocation7 + $0x1], 0 }
  0x1c   :  { %24 = vsyncpa [#allocation10], 0 }
  0x1d   :  { %25 = vsyncpa [#allocation8], 0 }
  0x1e   :  { %27 = vsyncpa [#allocation8 + $0x1], 0  ;;  %s2155_s1 = smov 0   ;;  %s2157_s30 = smov 0  }
  0x1f   :  { %s2159_s7 = smov 0   ;;  %s2161_s8 = smov 0  }
  0x20   :  { %s2163_s9 = smov 0   ;;  %s2165_s10 = smov 0  }
  0x21   :  { %s2167_s11 = smov 0   ;;  %s2169_s12 = smov 0  }
  0x22   :  { %s2171_s13 = smov 0  }
  0x23 LB: > { %2413 = sst [smem:[#allocation18_spill]] %s2078_s7  ;;  %s1444_s14 = sadd.s32 4294967295, %s2102_s13   ;;  %s2102_s13 = sphi %s2171_s13, %s33_s13   ;;  %s2098_s12 = sphi %s2169_s12, %s2436_s12   ;;  %s2094_s11 = sphi %s2167_s11, %s2435_s11   ;;  %s2090_s10 = sphi %s2165_s10, %s2441_s10   ;;  %s2086_s9 = sphi %s2163_s9, %s2440_s9   ;;  %s2082_s8 = sphi %s2161_s8, %s2439_s8   ;;  %s2078_s7 = sphi %s2159_s7, %s2434_s7   ;;  %s2074_s30 = sphi %s2157_s30, %s2438_s30   ;;  %s2070_s1 = sphi %s2155_s1, %s2437_s1  }
  0x24   : > { %2414 = sst [smem:[#allocation19_spill]] %s2098_s12  ;;  %s1445_s15 = sadd.s32 4294967294, %s2102_s13  }
  0x25   : > { %2415 = sst [smem:[#allocation20_spill]] %s2102_s13  ;;  %p69_p10 = scmp.ne.s32.totalorder %s2086_s9, %s2082_s8 }
  0x26   : > { %p2201_p11 = scmp.eq.s32.totalorder %s1444_s14, 0  ;;  %p167_p12 = scmp.ne.s32.totalorder %s2078_s7, %s2074_s30 }
  0x27   : > { %p168_p0 = scmp.eq.s32.totalorder %s1444_s14, 1  ;;  %p173_p1 = scmp.ne.s32.totalorder %s2074_s30, %s2070_s1 }
  0x28   : > { %s2416_s16 = scalar_select %p2201_p11, 1, 0 }
  0x29   : > { %p2209_p13 = por %p2201_p11, %p69_p10  ;;  %p174_p2 = scmp.eq.s32.totalorder %s1445_s15, 1 }
  0x2a   : > { %p2215_p3 = por %p168_p0, %p167_p12  ;;  %p1446_p4 = scmp.ge.s32.totalorder %s2102_s13, 1 }
  0x2b   : > { %s2417_s17 = scalar_select %p2209_p13, 1, 0 }
  0x2c   : > { %s2418_s18 = scalar_select %p2215_p3, 1, 0 }
  0x2d   : > { %p2220_p5 = por %p174_p2, %p173_p1  ;;  %p181_p6 = scmp.lt.s32.totalorder %s2102_s13, 3 }
  0x2e   : > { %s2106_s21 = smov [#allocation9]   ;;  %s45_s24 = sadd.s32 1, %s2098_s12 }
  0x2f   : > { %s2419_s19 = scalar_select %p2220_p5, 1, 0 }
  0x30   : > { %p2225_p7 = pnand %p1446_p4, %p181_p6  ;;  %s197_s22 = sshll.u32 %s2106_s21, 4  ;;  %s198_s22 = int_to_ptr.vmem [resolvable:$true] %s197_s22 }
  0x31   : > { %s1949_s25 = scalar_lea.vmem %s198_s22, 16384  ;;  %p1957_p4 = scmp.lt.s32.totalorder %s198_s22, %s198_s22 }
  0x32   : > { %s2420_s20 = scalar_select %p2225_p7, 1, 0 }
  0x33   : > { %p1615_p8 = pneg %p2225_p7  ;;  %p1950_p0 = scmp.ne.s32.totalorder %s198_s22, %s1949_s25 }
  0x34   : > { %p1958_p6 = scmp.lt.s32.totalorder %s1949_s25, %s1949_s25 }
  0x35   : > { %p2234_p10 = pnand %p1615_p8, %p2201_p11 }
  0x36   : > { %p1959_p5 = por %p1958_p6, %p1957_p4 }
  0x37   : > { %p1940_p12 = pneg %p2234_p10 }
  0x39   : > { %p1952_p1 = pnand %p1950_p0, %p1940_p12 }
  0x3b   : > { %p1953_p2 = pneg %p1952_p1 }
  0x3d   : > { %p1960_p3 = pnand %p1959_p5, %p1953_p2 }
  0x3f   : > { %1963 = shalt.err (!%p1960_p3)
}
  0x40   : > { %s2107_s26 = smov 128   ;;  %s2108_s27 = smov 8  }
  0x41   : > { %s2422_s3 = sld [smem:[#allocation23_spill]]  ;;  %p47_p5 = scmp.ge.s32.totalorder %s45_s24, 2 }
  0x42   : > { %s157_s0 = sadd.s32 1, %s2078_s7  ;;  %s49_s8 = sld [smem:[#allocation4 + %s2098_s12]] }
  0x43   : > { %s2443_s24 = smov (%p47_p5, %s45_s24), 0  ;;  %p63_p3 = scmp.ne.s32.totalorder %s2090_s10, %s2086_s9 }
  0x44   : > { %2423 = sst [smem:[#allocation21_spill]] %s2443_s24  ;;  %p64_p8 = scmp.eq.s32.totalorder %s2102_s13, 0 }
  0x45   : > { %s50_s14 = sld [smem:[#allocation4 + %s2443_s24]]  ;;  %s154_s15 = ssub.s32 %s2098_s12, %s2443_s24 }
  0x46   : > { %p155_p12 = scmp.eq.s32.totalorder %s154_s15, 0  ;;  %s214_s21 = sand.u32 1, %s2090_s10  }
  0x47   : > { %1618 = dma.hbm_to_vmem [thread:$0]  (!%p2234_p10), %s2422_s3, 16384, %s198_s22, [#allocation10], %s2107_s26, %s2107_s26, %s2108_s27  }
  0x48   : > { %s2258_s23 = scalar_select %p155_p12, %s2078_s7, %s157_s0  }
  0x49   : > { %p65_p0 = por %p64_p8, %p63_p3  ;;  %s56_s25 = sadd.s32 1, %s2090_s10 }
  0x4a   : > { %2424 = sst [smem:[#allocation22_spill]] %s2258_s23  ;;  %p1630_p10 = scmp.lt.s32.totalorder %s2102_s13, 2 }
  0x4b   : > { %s51_s22 = ssub.s32 %s49_s8, %s50_s14  ;;  %s1449_s26 = sshll.u32 %s214_s21, 5 }
  0x4c   : > { %p54_p1 = scmp.eq.s32.totalorder %s51_s22, 0  ;;  %p2262_p2 = pnand %p1630_p10, %p65_p0 }
  0x4d   : > { %s1607_s28 = scalar_select %p65_p0, [#allocation4], [#allocation12] }
  0x4e   : > { %s2267_s29 = scalar_select %p54_p1, %s2090_s10, %s56_s25  }
  0x4f   : > { %s1608_s3 = scalar_select %p65_p0, %s2098_s12, 0 }
  0x50   : > { %s2445_s28 = smov (!%p1630_p10, %s1607_s28), [#allocation13]  ;;  %s218_s0 = scalar_lea.vmem [#allocation6], %s1449_s26 }
  0x51   : > { %s2447_s3 = smov (!%p1630_p10, %s1608_s3), 0  ;;  %s229_s24 = sshll.u32 %s218_s0, 4  ;;  %s2270_s24 = int_to_ptr.vmem [resolvable:$true] %s229_s24 }
  0x52   : > { %s219_s15 = sld [smem:[%s2445_s28 + %s2447_s3]]  ;;  %s215_s7 = scalar_lea.sflag [#allocation7], %s214_s21 }
  0x53   : > { %p1966_p6 = pneg %p2262_p2  ;;  %s1969_s3 = scalar_lea.hbm %s2396_s2, 1024 }
  0x58   : > { %s1602_s23 = sshll.u32 %s219_s15, 9 }
  0x59   : > { %s227_s22 = scalar_lea.hbm %s2396_s2, %s1602_s23 }
  0x5a   : > { %s1964_s13 = scalar_lea.hbm %s227_s22, 512  ;;  %p1970_p8 = scmp.lt.s32.totalorder %s227_s22, %s2396_s2 }
  0x5b   : > { %p1965_p4 = scmp.ne.s32.totalorder %s227_s22, %s1964_s13  ;;  %p1971_p12 = scmp.lt.s32.totalorder %s1969_s3, %s1964_s13 }
  0x5d   : > { %p1967_p5 = pnand %p1966_p6, %p1965_p4  ;;  %p1972_p0 = por %p1971_p12, %p1970_p8 }
  0x5f   : > { %p1968_p3 = pneg %p1967_p5 }
  0x61   : > { %p1973_p10 = pnand %p1972_p0, %p1968_p3 }
  0x63   : > { %1976 = shalt.err (!%p1973_p10)
}
  0x64   : > { %s1977_s21 = scalar_lea.vmem %s2270_s24, 512  ;;  %s2109_s23 = smov [#allocation6]  }
  0x65   : > { %p1978_p1 = scmp.ne.s32.totalorder %s2270_s24, %s1977_s21  ;;  %s1982_s15 = sshll.u32 %s2109_s23, 4  ;;  %s1983_s15 = int_to_ptr.vmem [resolvable:$false] %s1982_s15 }
  0x66   : > { %s1984_s12 = scalar_lea.vmem %s1983_s15, 1024  ;;  %p1985_p5 = scmp.lt.s32.totalorder %s2270_s24, %s1983_s15 }
  0x67   : > { %p1980_p9 = pnand %p1978_p1, %p1966_p6  ;;  %p1986_p11 = scmp.lt.s32.totalorder %s1984_s12, %s1977_s21 }
  0x69   : > { %p1981_p4 = pneg %p1980_p9  ;;  %p1987_p13 = por %p1986_p11, %p1985_p5 }
  0x6b   : > { %p1988_p7 = pnand %p1987_p13, %p1981_p4 }
  0x6d   : > { %1991 = shalt.err (!%p1988_p7)
}
  0x6e   : > { %1624 = dma.hbm_to_vmem [thread:$0]  (!%p2262_p2), %s227_s22, 512, %s2270_s24, %s215_s7  }
  0x6f   : > { %p2426_p3 = scmp.ne.s32.totalorder %s2420_s20, 0 }
  0x70   : > { %s249_s13 = sand.u32 (!%p2426_p3), 1, %s2086_s9   ;;  %p2427_p9 = scmp.ne.s32.totalorder (!%p2426_p3), %s2417_s17, 0 }
  0x71   : > { %247 = sbr.rel (%p2426_p3) target bundleno = 636 (0x27c), region = 36  ;;  %s1453_s0 = sshll.u32 (!%p2426_p3), %s249_s13, 5 }
  0x72   : > { %s250_s8 = scalar_lea.sflag (!%p2426_p3), [#allocation7], %s249_s13  ;;  %s2292_s14 = scalar_lea.vmem (!%p2426_p3), [#allocation6], %s1453_s0 }
  0x76   : > { %2057 = dma.done.wait (%p2427_p9), %s250_s8, 512  }
  0x77   : > { %2059 = vsyncadd (%p2427_p9), %s250_s8, 4294966784  ;;  %p2428_p11 = scmp.ne.s32.totalorder %s2416_s16, 0 }
  0x79   : > { %2061 = dma.done.wait (%p2428_p11), [#allocation10], 16384  }
  0x7a   : > { %2063 = vsyncadd (%p2428_p11), [#allocation10], 4294950912  ;;  %s284_s7 = sand.u32 1, %s2074_s30   ;;  %s290_s20 = sld [smem:[#allocation4 + %s2094_s11]]  ;;  %v2110_v0 = vmov 0.0  }
  0x7b   : > { %s1455_s24 = sshll.u32 %s284_s7, 3  ;;  %303 = vst [vmem:[#allocation2] sm:$0xff] %v2110_v0  ;;  %304 = vst [vmem:[#allocation2 + $0x8] sm:$0xff] %v2110_v0  ;;  %s2307_s27 = sld [smem:[#allocation5 + %s2094_s11]] }
  0x7c   : > { %s2314_s3 = scalar_lea.vmem [#allocation11], %s1455_s24 }
  0x80   : > { %p291_p13 = scmp.lt.s32.totalorder %s290_s20, 1 }
  0x81   : > { %p1457_p7 = scmp.le.s32.totalorder %s2307_s27, 0 }
  0x82   : > { %s2449_s20 = smov (!%p291_p13, %s290_s20), 1 }
  0x83   : > { %s1456_s17 = sshll.u32 %s2449_s20, 3  ;;  %307 = sbr.rel (%p1457_p7) target bundleno = 467 (0x1d3), region = 52 }
  0x84   : > { %s2312_s16 = scalar_lea.vmem %s2399_s5, %s1456_s17 }
  0x88   : > { %v1713_v1 = vld [vmem:[#allocation9 + $0x74] ss:$8 sps:$4 sm:$0xff]   ;;  %v1717_v3 = vld [vmem:[#allocation9 + $0x70] ss:$8 sps:$4 sm:$0xff]   ;;  %v1719_v5 = vld [vmem:[#allocation9 + $0x64] ss:$8 sps:$4 sm:$0xff]  }
  0x89   : > { %v1715_v2 = vld [vmem:[#allocation9 + $0x174] ss:$8 sps:$4 sm:$0xff]   ;;  %1110 = vmatprep.subr.bf16.mxu0 %v1713_v1  ;;  %v1718_v4 = vld [vmem:[#allocation9 + $0x170] ss:$8 sps:$4 sm:$0xff]   ;;  %v1721_v6 = vld [vmem:[#allocation9 + $0x164] ss:$8 sps:$4 sm:$0xff]  }
  0x8a   : > { %1151 = vmatprep.subr.bf16.mxu1 %v1715_v2  ;;  %1111 = vmatpush1.bf16.msra.mxu0 %v1717_v3  ;;  %v1723_v7 = vld [vmem:[#allocation9 + $0x60] ss:$8 sps:$4 sm:$0xff]   ;;  %v1725_v9 = vld [vmem:[#allocation9 + $0x54] ss:$8 sps:$4 sm:$0xff]   ;;  %v1729_v11 = vld [vmem:[#allocation9 + $0x50] ss:$8 sps:$4 sm:$0xff]  }
  0x8b   : > { %1152 = vmatpush1.bf16.msra.mxu1 %v1718_v4  ;;  %1112 = vmatprep.subr.bf16.mxu0 %v1719_v5  ;;  %v1724_v8 = vld [vmem:[#allocation9 + $0x160] ss:$8 sps:$4 sm:$0xff]   ;;  %v1727_v10 = vld [vmem:[#allocation9 + $0x154] ss:$8 sps:$4 sm:$0xff]   ;;  %v1730_v12 = vld [vmem:[#allocation9 + $0x150] ss:$8 sps:$4 sm:$0xff]  }
  0x8c   : > { %1153 = vmatprep.subr.bf16.mxu1 %v1721_v6  ;;  %v1731_v13 = vld [vmem:[#allocation9 + $0x44] ss:$8 sps:$4 sm:$0xff]   ;;  %v1735_v15 = vld [vmem:[#allocation9 + $0x40] ss:$8 sps:$4 sm:$0xff]   ;;  %v1737_v17 = vld [vmem:[#allocation9 + $0x34] ss:$8 sps:$4 sm:$0xff]  }
  0x8d   : > { %v1733_v14 = vld [vmem:[#allocation9 + $0x144] ss:$8 sps:$4 sm:$0xff]   ;;  %v1736_v16 = vld [vmem:[#allocation9 + $0x140] ss:$8 sps:$4 sm:$0xff]   ;;  %v1739_v18 = vld [vmem:[#allocation9 + $0x134] ss:$8 sps:$4 sm:$0xff]  }
  0x8e   : > { %1113 = vmatpush1.bf16.msra.mxu0 %v1723_v7  ;;  %v1741_v19 = vld [vmem:[#allocation9 + $0x30] ss:$8 sps:$4 sm:$0xff]   ;;  %v1743_v21 = vld [vmem:[#allocation9 + $0x24] ss:$8 sps:$4 sm:$0xff]   ;;  %v1747_v23 = vld [vmem:[#allocation9 + $0x20] ss:$8 sps:$4 sm:$0xff]  }
  0x8f   : > { %1154 = vmatpush1.bf16.msra.mxu1 %v1724_v8  ;;  %1114 = vmatprep.subr.bf16.mxu0 %v1725_v9  ;;  %v1742_v20 = vld [vmem:[#allocation9 + $0x130] ss:$8 sps:$4 sm:$0xff]   ;;  %v1745_v22 = vld [vmem:[#allocation9 + $0x124] ss:$8 sps:$4 sm:$0xff]   ;;  %v1748_v24 = vld [vmem:[#allocation9 + $0x120] ss:$8 sps:$4 sm:$0xff]  }
  0x90   : > { %1155 = vmatprep.subr.bf16.mxu1 %v1727_v10  ;;  %v1749_v25 = vld [vmem:[#allocation9 + $0x14] ss:$8 sps:$4 sm:$0xff]   ;;  %v1753_v27 = vld [vmem:[#allocation9 + $0x10] ss:$8 sps:$4 sm:$0xff]   ;;  %v1755_v29 = vld [vmem:[#allocation9 + $0x4] ss:$8 sps:$4 sm:$0xff]  }
  0x91   : > { %v1751_v26 = vld [vmem:[#allocation9 + $0x114] ss:$8 sps:$4 sm:$0xff]   ;;  %v1754_v28 = vld [vmem:[#allocation9 + $0x110] ss:$8 sps:$4 sm:$0xff]   ;;  %v1757_v30 = vld [vmem:[#allocation9 + $0x104] ss:$8 sps:$4 sm:$0xff]  }
  0x92   : > { %1115 = vmatpush1.bf16.msra.mxu0 %v1729_v11  ;;  %v1759_v31 = vld [vmem:[#allocation9] ss:$8 sps:$4 sm:$0xff]   ;;  %v1761_v33 = vld [vmem:[#allocation9 + $0xf4] ss:$8 sps:$4 sm:$0xff]   ;;  %v1765_v35 = vld [vmem:[#allocation9 + $0xf0] ss:$8 sps:$4 sm:$0xff]  }
  0x93   : > { %1156 = vmatpush1.bf16.msra.mxu1 %v1730_v12  ;;  %1116 = vmatprep.subr.bf16.mxu0 %v1731_v13  ;;  %v1760_v32 = vld [vmem:[#allocation9 + $0x100] ss:$8 sps:$4 sm:$0xff]   ;;  %v1763_v34 = vld [vmem:[#allocation9 + $0x1f4] ss:$8 sps:$4 sm:$0xff]   ;;  %v1766_v36 = vld [vmem:[#allocation9 + $0x1f0] ss:$8 sps:$4 sm:$0xff]  }
  0x94   : > { %1157 = vmatprep.subr.bf16.mxu1 %v1733_v14  ;;  %v1767_v37 = vld [vmem:[#allocation9 + $0xe4] ss:$8 sps:$4 sm:$0xff]   ;;  %v1771_v39 = vld [vmem:[#allocation9 + $0xe0] ss:$8 sps:$4 sm:$0xff]   ;;  %v1773_v41 = vld [vmem:[#allocation9 + $0xd4] ss:$8 sps:$4 sm:$0xff]  }
  0x95   : > { %v1769_v38 = vld [vmem:[#allocation9 + $0x1e4] ss:$8 sps:$4 sm:$0xff]   ;;  %v1772_v40 = vld [vmem:[#allocation9 + $0x1e0] ss:$8 sps:$4 sm:$0xff]   ;;  %v1775_v42 = vld [vmem:[#allocation9 + $0x1d4] ss:$8 sps:$4 sm:$0xff]  }
  0x96   : > { %1117 = vmatpush1.bf16.msra.mxu0 %v1735_v15  ;;  %v1777_v43 = vld [vmem:[#allocation9 + $0xd0] ss:$8 sps:$4 sm:$0xff]   ;;  %v1779_v45 = vld [vmem:[#allocation9 + $0xc4] ss:$8 sps:$4 sm:$0xff]   ;;  %v1783_v50 = vld [vmem:[#allocation9 + $0xc0] ss:$8 sps:$4 sm:$0xff]  }
  0x97   : > { %1158 = vmatpush1.bf16.msra.mxu1 %v1736_v16  ;;  %1118 = vmatprep.subr.bf16.mxu0 %v1737_v17  ;;  %v1778_v44 = vld [vmem:[#allocation9 + $0x1d0] ss:$8 sps:$4 sm:$0xff]   ;;  %v1781_v46 = vld [vmem:[#allocation9 + $0x1c4] ss:$8 sps:$4 sm:$0xff]   ;;  %v1784_v51 = vld [vmem:[#allocation9 + $0x1c0] ss:$8 sps:$4 sm:$0xff]  }
  0x98   : > { %1159 = vmatprep.subr.bf16.mxu1 %v1739_v18  ;;  %v310_v47 = vld [vmem:[%s2292_s14] sm:$0xff]  ;;  %v311_v49 = vld [vmem:[%s2292_s14 + $0x8] sm:$0xff]  ;;  %v1785_v53 = vld [vmem:[#allocation9 + $0xb4] ss:$8 sps:$4 sm:$0xff]  }
  0x99   : > { %v1459_v48 = vcombine.high %v310_v47, %v310_v47  ;;  %v1461_v52 = vcombine.high %v311_v49, %v311_v49  ;;  %v1787_v54 = vld [vmem:[#allocation9 + $0x1b4] ss:$8 sps:$4 sm:$0xff]   ;;  %v1789_v55 = vld [vmem:[#allocation9 + $0xb0] ss:$8 sps:$4 sm:$0xff]   ;;  %v1791_v57 = vld [vmem:[#allocation9 + $0xa4] ss:$8 sps:$4 sm:$0xff]   ;;  %v1458_v7 = vcombine.low %v310_v47, %v310_v47  ;;  %v1460_v8 = vcombine.low %v311_v49, %v311_v49 }
  0x9a   : > { %1119 = vmatpush1.bf16.msra.mxu0 %v1741_v19  ;;  %v1790_v56 = vld [vmem:[#allocation9 + $0x1b0] ss:$8 sps:$4 sm:$0xff]   ;;  %v1793_v58 = vld [vmem:[#allocation9 + $0x1a4] ss:$8 sps:$4 sm:$0xff]   ;;  %v1795_v59 = vld [vmem:[#allocation9 + $0xa0] ss:$8 sps:$4 sm:$0xff]  }
  0x9b   : > { %1160 = vmatpush1.bf16.msra.mxu1 %v1742_v20  ;;  %1120 = vmatprep.subr.bf16.mxu0 %v1743_v21  ;;  %v1796_v60 = vld [vmem:[#allocation9 + $0x1a0] ss:$8 sps:$4 sm:$0xff]   ;;  %v1797_v61 = vld [vmem:[#allocation9 + $0x94] ss:$8 sps:$4 sm:$0xff]   ;;  %v1801_v63 = vld [vmem:[#allocation9 + $0x90] ss:$8 sps:$4 sm:$0xff]  }
  0x9c   : > { %1161 = vmatprep.subr.bf16.mxu1 %v1745_v22  ;;  %1142 = vmatprep.mubr.bf16.mxu0 %v1459_v48  ;;  %v1799_v62 = vld [vmem:[#allocation9 + $0x194] ss:$8 sps:$4 sm:$0xff]   ;;  %v1802_v0 = vld [vmem:[#allocation9 + $0x190] ss:$8 sps:$4 sm:$0xff]   ;;  %v1803_v1 = vld [vmem:[#allocation9 + $0x84] ss:$8 sps:$4 sm:$0xff]  }
  0x9d   : > { %1183 = vmatprep.mubr.bf16.mxu1 %v1461_v52  ;;  %v1805_v2 = vld [vmem:[#allocation9 + $0x184] ss:$8 sps:$4 sm:$0xff]   ;;  %v1807_v3 = vld [vmem:[#allocation9 + $0x80] ss:$8 sps:$4 sm:$0xff]   ;;  %v1815_v5 = vld [vmem:[#allocation9 + $0x274] ss:$8 sps:$4 sm:$0xff]  }
  0x9e   : > { %1121 = vmatpush1.bf16.msra.mxu0 %v1747_v23  ;;  %v1808_v4 = vld [vmem:[#allocation9 + $0x180] ss:$8 sps:$4 sm:$0xff]   ;;  %v1818_v6 = vld [vmem:[#allocation9 + $0x374] ss:$8 sps:$4 sm:$0xff]   ;;  %v1813_v9 = vld [vmem:[#allocation9 + $0x270] ss:$8 sps:$4 sm:$0xff]  }
  0x9f   : > { %1162 = vmatpush1.bf16.msra.mxu1 %v1748_v24  ;;  %1122 = vmatprep.subr.bf16.mxu0 %v1749_v25  ;;  %v1816_v10 = vld [vmem:[#allocation9 + $0x370] ss:$8 sps:$4 sm:$0xff]   ;;  %v1821_v11 = vld [vmem:[#allocation9 + $0x264] ss:$8 sps:$4 sm:$0xff]   ;;  %v1819_v13 = vld [vmem:[#allocation9 + $0x260] ss:$8 sps:$4 sm:$0xff]  }
  0xa0   : > { %1163 = vmatprep.subr.bf16.mxu1 %v1751_v26  ;;  %v1824_v12 = vld [vmem:[#allocation9 + $0x364] ss:$8 sps:$4 sm:$0xff]   ;;  %v1822_v14 = vld [vmem:[#allocation9 + $0x360] ss:$8 sps:$4 sm:$0xff]   ;;  %v1827_v15 = vld [vmem:[#allocation9 + $0x254] ss:$8 sps:$4 sm:$0xff]  }
  0xa1   : > { %v1830_v16 = vld [vmem:[#allocation9 + $0x354] ss:$8 sps:$4 sm:$0xff]   ;;  %v1825_v17 = vld [vmem:[#allocation9 + $0x250] ss:$8 sps:$4 sm:$0xff]   ;;  %v1833_v19 = vld [vmem:[#allocation9 + $0x244] ss:$8 sps:$4 sm:$0xff]  }
  0xa2   : > { %1123 = vmatpush1.bf16.msra.mxu0 %v1753_v27  ;;  %v1828_v18 = vld [vmem:[#allocation9 + $0x350] ss:$8 sps:$4 sm:$0xff]   ;;  %v1836_v20 = vld [vmem:[#allocation9 + $0x344] ss:$8 sps:$4 sm:$0xff]   ;;  %v1831_v21 = vld [vmem:[#allocation9 + $0x240] ss:$8 sps:$4 sm:$0xff]  }
  0xa3   : > { %1164 = vmatpush1.bf16.msra.mxu1 %v1754_v28  ;;  %1124 = vmatprep.subr.bf16.mxu0 %v1755_v29  ;;  %v1834_v22 = vld [vmem:[#allocation9 + $0x340] ss:$8 sps:$4 sm:$0xff]   ;;  %v1839_v23 = vld [vmem:[#allocation9 + $0x234] ss:$8 sps:$4 sm:$0xff]   ;;  %v1837_v25 = vld [vmem:[#allocation9 + $0x230] ss:$8 sps:$4 sm:$0xff]  }
  0xa4   : > { %1165 = vmatprep.subr.bf16.mxu1 %v1757_v30  ;;  %v1842_v24 = vld [vmem:[#allocation9 + $0x334] ss:$8 sps:$4 sm:$0xff]   ;;  %v1840_v26 = vld [vmem:[#allocation9 + $0x330] ss:$8 sps:$4 sm:$0xff]   ;;  %v1845_v27 = vld [vmem:[#allocation9 + $0x224] ss:$8 sps:$4 sm:$0xff]  }
  0xa5   : > { %v1848_v28 = vld [vmem:[#allocation9 + $0x324] ss:$8 sps:$4 sm:$0xff]   ;;  %v1843_v29 = vld [vmem:[#allocation9 + $0x220] ss:$8 sps:$4 sm:$0xff]   ;;  %v1878_v52 = vld [vmem:[#allocation9 + $0x3d4] ss:$8 sps:$4 sm:$0xff]  }
  0xa6   : > { %1125 = vmatpush1.bf16.msra.mxu0 %v1759_v31  ;;  %v1846_v30 = vld [vmem:[#allocation9 + $0x320] ss:$8 sps:$4 sm:$0xff]   ;;  %v1851_v31 = vld [vmem:[#allocation9 + $0x214] ss:$8 sps:$4 sm:$0xff]   ;;  %v1869_v47 = vld [vmem:[#allocation9 + $0x2e4] ss:$8 sps:$4 sm:$0xff]  }
  0xa7   : > { %1166 = vmatpush1.bf16.msra.mxu1 %v1760_v32  ;;  %1126 = vmatprep.subr.bf16.mxu0 %v1761_v33  ;;  %v1854_v32 = vld [vmem:[#allocation9 + $0x314] ss:$8 sps:$4 sm:$0xff]   ;;  %v1872_v48 = vld [vmem:[#allocation9 + $0x3e4] ss:$8 sps:$4 sm:$0xff]   ;;  %v1867_v49 = vld [vmem:[#allocation9 + $0x2e0] ss:$8 sps:$4 sm:$0xff]  }
  0xa8   : > { %1167 = vmatprep.subr.bf16.mxu1 %v1763_v34  ;;  %v2322_v33 = vld [vmem:[%s2292_s14 + $0x10] sm:$0xff]  ;;  %v2325_v34 = vld [vmem:[%s2292_s14 + $0x18] sm:$0xff] }
  0xaa   : > { %1127 = vmatpush2.bf16.msra.mxu0 %v1765_v35  ;;  %v1463_v35 = vcombine.high %v2322_v33, %v2322_v33 }
  0xab   : > { %1168 = vmatpush2.bf16.msra.mxu1 %v1766_v36  ;;  %1128 = vmatprep.subr.bf16.mxu0 %v1767_v37  ;;  %v1465_v36 = vcombine.high %v2325_v34, %v2325_v34  ;;  %v1849_v37 = vld [vmem:[#allocation9 + $0x210] ss:$8 sps:$4 sm:$0xff]  }
  0xac   : > { %1169 = vmatprep.subr.bf16.mxu1 %v1769_v38  ;;  %v1852_v38 = vld [vmem:[#allocation9 + $0x310] ss:$8 sps:$4 sm:$0xff]  }
  0xae   : > { %1129 = vmatpush2.bf16.msra.mxu0 %v1771_v39  ;;  %v1857_v39 = vld [vmem:[#allocation9 + $0x204] ss:$8 sps:$4 sm:$0xff]  }
  0xaf   : > { %1170 = vmatpush2.bf16.msra.mxu1 %v1772_v40  ;;  %1130 = vmatprep.subr.bf16.mxu0 %v1773_v41  ;;  %v1860_v40 = vld [vmem:[#allocation9 + $0x304] ss:$8 sps:$4 sm:$0xff]   ;;  %v1855_v41 = vld [vmem:[#allocation9 + $0x200] ss:$8 sps:$4 sm:$0xff]  }
  0xb0   : > { %1171 = vmatprep.subr.bf16.mxu1 %v1775_v42  ;;  %v1858_v42 = vld [vmem:[#allocation9 + $0x300] ss:$8 sps:$4 sm:$0xff]  }
  0xb2   : > { %1131 = vmatpush2.bf16.msra.mxu0 %v1777_v43  ;;  %v1863_v43 = vld [vmem:[#allocation9 + $0x2f4] ss:$8 sps:$4 sm:$0xff]  }
  0xb3   : > { %1172 = vmatpush2.bf16.msra.mxu1 %v1778_v44  ;;  %1132 = vmatprep.subr.bf16.mxu0 %v1779_v45  ;;  %v1866_v44 = vld [vmem:[#allocation9 + $0x3f4] ss:$8 sps:$4 sm:$0xff]   ;;  %v1861_v45 = vld [vmem:[#allocation9 + $0x2f0] ss:$8 sps:$4 sm:$0xff]  }
  0xb4   : > { %1173 = vmatprep.subr.bf16.mxu1 %v1781_v46  ;;  %v1864_v46 = vld [vmem:[#allocation9 + $0x3f0] ss:$8 sps:$4 sm:$0xff]  }
  0xb6   : > { %1133 = vmatpush2.bf16.msra.mxu0 %v1783_v50  ;;  %v1870_v50 = vld [vmem:[#allocation9 + $0x3e0] ss:$8 sps:$4 sm:$0xff]  }
  0xb7   : > { %1174 = vmatpush2.bf16.msra.mxu1 %v1784_v51  ;;  %1134 = vmatprep.subr.bf16.mxu0 %v1785_v53  ;;  %v1875_v51 = vld [vmem:[#allocation9 + $0x2d4] ss:$8 sps:$4 sm:$0xff]   ;;  %v1873_v53 = vld [vmem:[#allocation9 + $0x2d0] ss:$8 sps:$4 sm:$0xff]  }
  0xb8   : > { %1175 = vmatprep.subr.bf16.mxu1 %v1787_v54  ;;  %v1876_v54 = vld [vmem:[#allocation9 + $0x3d0] ss:$8 sps:$4 sm:$0xff]  }
  0xba   : > { %1135 = vmatpush2.bf16.msra.mxu0 %v1789_v55  ;;  %v1881_v55 = vld [vmem:[#allocation9 + $0x2c4] ss:$8 sps:$4 sm:$0xff]  }
  0xbb   : > { %1176 = vmatpush2.bf16.msra.mxu1 %v1790_v56  ;;  %1136 = vmatprep.subr.bf16.mxu0 %v1791_v57  ;;  %v1884_v56 = vld [vmem:[#allocation9 + $0x3c4] ss:$8 sps:$4 sm:$0xff]   ;;  %v1879_v57 = vld [vmem:[#allocation9 + $0x2c0] ss:$8 sps:$4 sm:$0xff]  }
  0xbc   : > { %1177 = vmatprep.subr.bf16.mxu1 %v1793_v58  ;;  %v1882_v58 = vld [vmem:[#allocation9 + $0x3c0] ss:$8 sps:$4 sm:$0xff]  }
  0xbe   : > { %1137 = vmatpush2.bf16.msra.mxu0 %v1795_v59  ;;  %v1887_v59 = vld [vmem:[#allocation9 + $0x2b4] ss:$8 sps:$4 sm:$0xff]  }
  0xbf   : > { %1178 = vmatpush2.bf16.msra.mxu1 %v1796_v60  ;;  %1138 = vmatprep.subr.bf16.mxu0 %v1797_v61  ;;  %v1890_v60 = vld [vmem:[#allocation9 + $0x3b4] ss:$8 sps:$4 sm:$0xff]   ;;  %v1885_v61 = vld [vmem:[#allocation9 + $0x2b0] ss:$8 sps:$4 sm:$0xff]  }
  0xc0   : > { %1179 = vmatprep.subr.bf16.mxu1 %v1799_v62  ;;  %v1888_v62 = vld [vmem:[#allocation9 + $0x3b0] ss:$8 sps:$4 sm:$0xff]  }
  0xc2   : > { %1139 = vmatpush2.bf16.msra.mxu0 %v1801_v63  ;;  %v1893_v63 = vld [vmem:[#allocation9 + $0x2a4] ss:$8 sps:$4 sm:$0xff]  }
  0xc3   : > { %1180 = vmatpush2.bf16.msra.mxu1 %v1802_v0  ;;  %1140 = vmatprep.subr.bf16.mxu0 %v1803_v1  ;;  %v1896_v0 = vld [vmem:[#allocation9 + $0x3a4] ss:$8 sps:$4 sm:$0xff]   ;;  %v1891_v1 = vld [vmem:[#allocation9 + $0x2a0] ss:$8 sps:$4 sm:$0xff]  }
  0xc4   : > { %1181 = vmatprep.subr.bf16.mxu1 %v1805_v2  ;;  %v1894_v2 = vld [vmem:[#allocation9 + $0x3a0] ss:$8 sps:$4 sm:$0xff]  }
  0xc6   : > { %1141 = vmatpush2.bf16.msra.mxu0 %v1807_v3  ;;  %v1899_v3 = vld [vmem:[#allocation9 + $0x294] ss:$8 sps:$4 sm:$0xff]  }
  0xc7   : > { %1182 = vmatpush2.bf16.msra.mxu1 %v1808_v4  ;;  %1192 = vmatprep.subr.bf16.mxu0 %v1815_v5  ;;  %v1902_v4 = vld [vmem:[#allocation9 + $0x394] ss:$8 sps:$4 sm:$0xff]   ;;  %v1897_v5 = vld [vmem:[#allocation9 + $0x290] ss:$8 sps:$4 sm:$0xff]  }
  0xc8   : > { %1233 = vmatprep.subr.bf16.mxu1 %v1818_v6  ;;  %v1900_v6 = vld [vmem:[#allocation9 + $0x390] ss:$8 sps:$4 sm:$0xff]  }
  0xc9   : > { %1143 = vmatmul.mubr.bf16.vlgmr.msra.gmra.mxu0 %v1458_v7  ;;  %v1905_v7 = vld [vmem:[#allocation9 + $0x284] ss:$8 sps:$4 sm:$0xff]  }
  0xca   : > { %1184 = vmatmul.mubr.bf16.vlgmr.msra.gmra.mxu1 %v1460_v8  ;;  %1193 = vmatpush1.bf16.msra.mxu0 %v1813_v9  ;;  %v1908_v8 = vld [vmem:[#allocation9 + $0x384] ss:$8 sps:$4 sm:$0xff]   ;;  %v1903_v9 = vld [vmem:[#allocation9 + $0x280] ss:$8 sps:$4 sm:$0xff]  }
  0xcb   : > { %1234 = vmatpush1.bf16.msra.mxu1 %v1816_v10  ;;  %1194 = vmatprep.subr.bf16.mxu0 %v1821_v11  ;;  %v1906_v10 = vld [vmem:[#allocation9 + $0x380] ss:$8 sps:$4 sm:$0xff]   ;;  %v1462_v11 = vcombine.low %v2322_v33, %v2322_v33 }
  0xcc   : > { %1235 = vmatprep.subr.bf16.mxu1 %v1824_v12  ;;  %1224 = vmatprep.mubr.bf16.mxu0 %v1463_v35  ;;  %v1464_v12 = vcombine.low %v2325_v34, %v2325_v34 }
  0xcd   : > { %1265 = vmatprep.mubr.bf16.mxu1 %v1465_v36 }
  0xce   : > { %1195 = vmatpush1.bf16.msra.mxu0 %v1819_v13 }
  0xcf   : > { %1236 = vmatpush1.bf16.msra.mxu1 %v1822_v14  ;;  %1196 = vmatprep.subr.bf16.mxu0 %v1827_v15 }
  0xd0   : > { %1237 = vmatprep.subr.bf16.mxu1 %v1830_v16 }
  0xd2   : > { %1197 = vmatpush1.bf16.msra.mxu0 %v1825_v17 }
  0xd3   : > { %1238 = vmatpush1.bf16.msra.mxu1 %v1828_v18  ;;  %1198 = vmatprep.subr.bf16.mxu0 %v1833_v19 }
  0xd4   : > { %1239 = vmatprep.subr.bf16.mxu1 %v1836_v20 }
  0xd6   : > { %1199 = vmatpush1.bf16.msra.mxu0 %v1831_v21 }
  0xd7   : > { %1240 = vmatpush1.bf16.msra.mxu1 %v1834_v22  ;;  %1200 = vmatprep.subr.bf16.mxu0 %v1839_v23 }
  0xd8   : > { %1241 = vmatprep.subr.bf16.mxu1 %v1842_v24 }
  0xda   : > { %1201 = vmatpush1.bf16.msra.mxu0 %v1837_v25 }
  0xdb   : > { %1242 = vmatpush1.bf16.msra.mxu1 %v1840_v26  ;;  %1202 = vmatprep.subr.bf16.mxu0 %v1845_v27  ;;  %v308_v26 = vld [vmem:[#allocation2] sm:$0xff] }
  0xdc   : > { %1243 = vmatprep.subr.bf16.mxu1 %v1848_v28 }
  0xde   : > { %1203 = vmatpush1.bf16.msra.mxu0 %v1843_v29 }
  0xdf   : > { %1244 = vmatpush1.bf16.msra.mxu1 %v1846_v30  ;;  %1204 = vmatprep.subr.bf16.mxu0 %v1851_v31  ;;  %v309_v31 = vld [vmem:[#allocation2 + $0x8] sm:$0xff] }
  0xe0   : > { %1245 = vmatprep.subr.bf16.mxu1 %v1854_v32 }
  0xe2   : > { %1205 = vmatpush1.bf16.msra.mxu0 %v1849_v37 }
  0xe3   : > { %1246 = vmatpush1.bf16.msra.mxu1 %v1852_v38  ;;  %1206 = vmatprep.subr.bf16.mxu0 %v1857_v39 }
  0xe4   : > { %1247 = vmatprep.subr.bf16.mxu1 %v1860_v40 }
  0xe6   : > { %1207 = vmatpush1.bf16.msra.mxu0 %v1855_v41 }
  0xe7   : > { %1248 = vmatpush1.bf16.msra.mxu1 %v1858_v42  ;;  %1208 = vmatprep.subr.bf16.mxu0 %v1863_v43 }
  0xe8   : > { %1249 = vmatprep.subr.bf16.mxu1 %v1866_v44 }
  0xea   : > { %1209 = vmatpush2.bf16.msra.mxu0 %v1861_v45 }
  0xeb   : > { %1250 = vmatpush2.bf16.msra.mxu1 %v1864_v46  ;;  %1210 = vmatprep.subr.bf16.mxu0 %v1869_v47 }
  0xec   : > { %1251 = vmatprep.subr.bf16.mxu1 %v1872_v48 }
  0xee   : > { %1211 = vmatpush2.bf16.msra.mxu0 %v1867_v49 }
  0xef   : > { %1252 = vmatpush2.bf16.msra.mxu1 %v1870_v50  ;;  %1212 = vmatprep.subr.bf16.mxu0 %v1875_v51 }
  0xf0   : > { %1253 = vmatprep.subr.bf16.mxu1 %v1878_v52 }
  0xf2   : > { %1213 = vmatpush2.bf16.msra.mxu0 %v1873_v53 }
  0xf3   : > { %1254 = vmatpush2.bf16.msra.mxu1 %v1876_v54  ;;  %1214 = vmatprep.subr.bf16.mxu0 %v1881_v55 }
  0xf4   : > { %1255 = vmatprep.subr.bf16.mxu1 %v1884_v56 }
  0xf6   : > { %1215 = vmatpush2.bf16.msra.mxu0 %v1879_v57 }
  0xf7   : > { %1256 = vmatpush2.bf16.msra.mxu1 %v1882_v58  ;;  %1216 = vmatprep.subr.bf16.mxu0 %v1887_v59 }
  0xf8   : > { %1257 = vmatprep.subr.bf16.mxu1 %v1890_v60 }
  0xfa   : > { %1217 = vmatpush2.bf16.msra.mxu0 %v1885_v61 }
  0xfb   : > { %1258 = vmatpush2.bf16.msra.mxu1 %v1888_v62  ;;  %1218 = vmatprep.subr.bf16.mxu0 %v1893_v63 }
  0xfc   : > { %1259 = vmatprep.subr.bf16.mxu1 %v1896_v0 }
  0xfe   : > { %1219 = vmatpush2.bf16.msra.mxu0 %v1891_v1 }
  0xff   : > { %1260 = vmatpush2.bf16.msra.mxu1 %v1894_v2  ;;  %1220 = vmatprep.subr.bf16.mxu0 %v1899_v3 }
 0x100   : > { %1261 = vmatprep.subr.bf16.mxu1 %v1902_v4 }
 0x102   : > { %1221 = vmatpush2.bf16.msra.mxu0 %v1897_v5 }
 0x103   : > { %1262 = vmatpush2.bf16.msra.mxu1 %v1900_v6  ;;  %1222 = vmatprep.subr.bf16.mxu0 %v1905_v7 }
 0x104   : > { %1263 = vmatprep.subr.bf16.mxu1 %v1908_v8 }
 0x106   : > { %1223 = vmatpush2.bf16.msra.mxu0 %v1903_v9 }
 0x107   : > { %1264 = vmatpush2.bf16.msra.mxu1 %v1906_v10 }
 0x109   : > { %1225 = vmatmul.mubr.bf16.vlgmr.msra.gmra.mxu0 %v1462_v11 }
 0x10a   : > { %1266 = vmatmul.mubr.bf16.vlgmr.msra.gmra.mxu1 %v1464_v12 }
 0x189   : > { %v1144_v13 = vpop.f32.mrf.mxu0 }
 0x18a   : > { %v1185_v14 = vpop.f32.mrf.mxu1 }
 0x18b   : > { %v1146_v15 = vpop.f32.mrf.mxu0  ;;  %v1186_v21 = vadd.f32 %v1185_v14, %v1144_v13 }
 0x18c   : > { %v1187_v16 = vpop.f32.mrf.mxu1 }
 0x18d   : > { %v1148_v17 = vpop.f32.mrf.mxu0  ;;  %v1188_v24 = vadd.f32 %v1187_v16, %v1146_v15 }
 0x18e   : > { %v1189_v18 = vpop.f32.mrf.mxu1 }
 0x18f   : > { %v1149_v19 = vpop.f32.mrf.mxu0 }
 0x190   : > { %v1190_v20 = vpop.f32.mrf.mxu1 }
 0x1c9   : > { %v1226_v22 = vpop.f32.mrf.mxu0 }
 0x1ca   : > { %v1267_v23 = vpop.f32.mrf.mxu1  ;;  %v1227_v25 = vadd.f32 %v1226_v22, %v1186_v21 }
 0x1cb   : > { %v1228_v27 = vpop.f32.mrf.mxu0 }
 0x1cc   : > { %v1269_v28 = vpop.f32.mrf.mxu1  ;;  %v1268_v29 = vadd.f32 %v1267_v23, %v1227_v25  ;;  %v1229_v30 = vadd.f32 %v1228_v27, %v1188_v24 }
 0x1cd   : > { %v1230_v32 = vpop.f32.mrf.mxu0 }
 0x1ce   : > { %v1271_v33 = vpop.f32.mrf.mxu1  ;;  %v1274_v34 = vadd.f32 %v1268_v29, %v308_v26  ;;  %v1270_v35 = vadd.f32 %v1269_v28, %v1229_v30 }
 0x1cf   : > { %v1231_v36 = vpop.f32.mrf.mxu0 }
 0x1d0   : > { %v1272_v37 = vpop.f32.mrf.mxu1  ;;  %1276 = vst [vmem:[#allocation2] sm:$0xff] %v1274_v34  ;;  %v1275_v38 = vadd.f32 %v1270_v35, %v309_v31 }
 0x1d2   : > { %1277 = vst [vmem:[#allocation2 + $0x8] sm:$0xff] %v1275_v38 }
 0x1d3 PF: > { %1283 = sbr.rel (%p1457_p7) target bundleno = 603 (0x25b), region = 60 }
 0x1d8   : > { %v1302_v39 = vld [vmem:[%s2312_s16] sm:$0xff]  ;;  %v2111_v40 = vmov 0   ;;  %v1288_v41 = vlaneseq }
 0x1d9   : > { %1913 = vset.pattern.permute.xlu0 %v2111_v40  ;;  %v1286_v45 = vld [vmem:[%s2398_s4] sm:$0x3]  ;;  %v1285_v49 = vld [vmem:[#allocation2 + $0x8] sm:$0xff] }
 0x1da   : > { %1305 = vperm.xlu0 %1913, %v1302_v39   ;;  %v1289_v42 = vshrl.u32 %v1288_v41, 7  ;;  %v1284_v48 = vld [vmem:[#allocation2] sm:$0xff] }
 0x1dc   : > { %v1290_v43 = vsub.s32 0, %v1289_v42  ;;  %v1294_v44 = vsub.s32 1, %v1289_v42 }
 0x1de   : > { %v1291_v46 = vrot.slane %v1286_v45, %v1290_v43  ;;  %v1295_v47 = vrot.slane %v1286_v45, %v1294_v44 }
 0x1e0   : > { %v1298_v50 = vadd.f32 %v1291_v46, %v1284_v48  ;;  %v1299_v51 = vadd.f32 %v1295_v47, %v1285_v49 }
 0x1e2   : > { %v1300_v52 = vmax.f32 %v1298_v50, 0.0  ;;  %v1301_v53 = vmax.f32 %v1299_v51, 0.0 }
 0x255   : > { %v1306_v54 = vpop.permute.xlu0 %1305 }
 0x256   : > { %v1308_v55 = vmul.f32 %v1306_v54, %v1300_v52  ;;  %v1309_v56 = vmul.f32 %v1306_v54, %v1301_v53 }
 0x258   : > { %v1603_v57 = vpack.c.bf16 %v1309_v56, %v1308_v55 }
 0x25a   : > { %1318 = vst [vmem:[%s2314_s3] sm:$0xff] %v1603_v57 }
 0x25b PF: > { %p1596_p2 = scmp.gt.s32.totalorder %s2307_s27, 0 }
 0x25d   : > { %1322 = sbr.rel (%p1596_p2) target bundleno = 612 (0x264), region = 64 }
 0x262   : > { %v2112_v58 = vmov 0  }
 0x263   : > { %1323 = vst [vmem:[%s2314_s3] sm:$0xff] %v2112_v58 }
 0x264 PF: > { %s1604_s21 = sshll.u32 %s2094_s11, 7  ;;  %s1339_s13 = sshll.u32 %s2314_s3, 4  ;;  %s1340_s13 = int_to_ptr.vmem [resolvable:$true] %s1339_s13 }
 0x265   : > { %s1337_s12 = scalar_lea.hbm %s2400_s6, %s1604_s21  ;;  %s1325_s0 = scalar_lea.sflag [#allocation8], %s284_s7 }
 0x266   : > { %s1992_s8 = scalar_lea.vmem %s1340_s13, 128  ;;  %p2429_p8 = scmp.ne.s32.totalorder %s2418_s18, 0 }
 0x267   : > { %p1993_p6 = scmp.ne.s32.totalorder %s1340_s13, %s1992_s8  ;;  %s2113_s14 = smov [#allocation11]  }
 0x268   : > { %s1996_s20 = sshll.u32 %s2113_s14, 4  ;;  %s1997_s20 = int_to_ptr.vmem [resolvable:$false] %s1996_s20 }
 0x269   : > { %p1994_p12 = pnand %p1993_p6, %p2429_p8  ;;  %s1998_s24 = scalar_lea.vmem %s1997_s20, 256 }
 0x26a   : > { %p1999_p10 = scmp.lt.s32.totalorder %s1340_s13, %s1997_s20  ;;  %p2000_p1 = scmp.lt.s32.totalorder %s1998_s24, %s1992_s8 }
 0x26b   : > { %p1995_p0 = pneg %p1994_p12 }
 0x26c   : > { %p2001_p4 = por %p2000_p1, %p1999_p10 }
 0x26e   : > { %p2002_p5 = pnand %p2001_p4, %p1995_p0 }
 0x270   : > { %2005 = shalt.err (!%p2002_p5)
}
 0x271   : > { %s2006_s11 = scalar_lea.hbm %s1337_s12, 128  ;;  %s2010_s17 = scalar_lea.hbm %s2400_s6, 256 }
 0x272   : > { %p2007_p3 = scmp.ne.s32.totalorder %s1337_s12, %s2006_s11  ;;  %p2011_p13 = scmp.lt.s32.totalorder %s1337_s12, %s2400_s6 }
 0x273   : > { %p2012_p7 = scmp.lt.s32.totalorder %s2010_s17, %s2006_s11 }
 0x274   : > { %p2008_p9 = pnand %p2007_p3, %p2429_p8 }
 0x275   : > { %p2013_p2 = por %p2012_p7, %p2011_p13 }
 0x276   : > { %p2009_p11 = pneg %p2008_p9 }
 0x278   : > { %p2014_p6 = pnand %p2013_p2, %p2009_p11 }
 0x27a   : > { %2017 = shalt.err (!%p2014_p6)
}
 0x27b   : > { %1613 = dma.vmem_to_hbm [thread:$0]  (%p2429_p8), %s1340_s13, 128, %s1337_s12, %s1325_s0  }
 0x27c PF: > { %s2430_s16 = sld [smem:[#allocation20_spill]]  ;;  %s1351_s3 = sand.u32 1, %s2070_s1  }
 0x27d   : > { %p2431_p12 = scmp.ne.s32.totalorder %s2419_s19, 0  ;;  %s1352_s26 = scalar_lea.sflag [#allocation8], %s1351_s3 }
 0x282   : > { %p2432_p0 = scmp.ge.s32.totalorder %s2430_s16, 2 }
 0x284   : > { %p1626_p10 = pnand %p2432_p0, %p2431_p12 }
 0x286   : > { %p1627_p1 = pneg %p1626_p10 }
 0x288   : > { %2065 = dma.done.wait (%p1627_p1), %s1352_s26, 128  }
 0x289   : > { %2067 = vsyncadd (%p1627_p1), %s1352_s26, 4294967168  ;;  %s33_s13 = sadd.s32 1, %s2430_s16   ;;  %s2433_s28 = sld [smem:[#allocation18_spill]] }
 0x28a   : > { %p30_p4 = scmp.ge.s32.totalorder %s33_s13, 4   ;;  %s2434_s7 = sld [smem:[#allocation22_spill]] }
 0x28b   : > { %s2435_s11 = sld [smem:[#allocation19_spill]]  ;;  %s2437_s1 = smov %s2074_s30 }
 0x28c   : > { %s2436_s12 = sld [smem:[#allocation21_spill]]  ;;  %s2439_s8 = smov %s2086_s9 }
 0x28d   : > { %s2440_s9 = smov %s2090_s10  ;;  %s2441_s10 = smov %s2267_s29 }
 0x28e   :  { %32 = sbr.rel (!%p30_p4) target bundleno = 35 (0x23), region = 109 }
 0x28f   : > { %s2438_s30 = smov %s2433_s28 }
 0x293   :  { %1357 = vsyncpa [#allocation7], 1 }
 0x294   :  { %1359 = vsyncpa [#allocation7 + $0x1], 1 }
 0x295   :  { %1360 = vsyncpa [#allocation10], 1 }
 0x296   :  { %1361 = vsyncpa [#allocation8], 1 }
 0x297   :  { %1363 = vsyncpa [#allocation8 + $0x1], 1 }

</bundles_post_ra>
